<compile_context>
chip_gen: v6e
topology: v6e:2x2x1
jax: 0.10.0
libtpu: 0.0.40
codegen_flags: <defaults>
</compile_context>

<pallas_src>
import math
import functools

import jax
import jax.numpy as jnp
from jax.experimental import pallas as pl
from jax.experimental.pallas import tpu as pltpu


# ------------------------- glue: structuring function -------------------------

def _get_y(size: int) -> jnp.ndarray:
    # matches get_y: integer grid coords minus (size//2, size//2)
    ii, jj = jnp.meshgrid(jnp.arange(size), jnp.arange(size), indexing="ij")
    coords = jnp.stack([ii, jj], axis=-1).astype(jnp.float32)  # (k, k, 2)
    origin = jnp.array([size // 2, size // 2], dtype=jnp.float32)
    return coords - origin


def _get_norm(y: jnp.ndarray, D: jnp.ndarray) -> jnp.ndarray:
    # y: (k, k, 2), D: (C, 2, 2) -> (C, k, k);  || D_c @ y_{ij} ||_2
    v = jnp.einsum("cab,ijb->cija", D, y)
    return jnp.sqrt(jnp.sum(v * v, axis=-1))


def _get_value(y: jnp.ndarray, alpha: float, t: float) -> jnp.ndarray:
    if alpha == 0.5:
        return jnp.where(y <= t, 0.0, jnp.inf)
    p = 2.0 * alpha / (2.0 * alpha - 1.0)
    const = t * (2.0 * alpha - 1.0) / math.pow(2.0 * alpha * t, p)
    return const * jnp.power(y, p)


def _make_kernel_table(dil_metric: jnp.ndarray, kernel_size: int,
                       alpha: float, t: float) -> jnp.ndarray:
    return _get_value(_get_norm(_get_y(kernel_size), dil_metric), alpha, t)


# --------------------------------- helpers -------------------------------------

def _round_up(a: int, m: int) -> int:
    return (a + m - 1) // m * m


def _pick_c_blk(C: int, stripe: int) -> int:
    """Largest divisor of C that keeps the packed slab near ~128 lanes."""
    if stripe >= 128:
        return 1
    target = max(1, 128 // stripe)
    if target >= C:
        return C
    for d in range(target, 0, -1):
        if C % d == 0:
            return d
    return 1


# ------------------------------ Pallas kernel ---------------------------------

def _dilation_kernel(ktab_ref, x_ref, o_ref, xp_ref, *,
                     H, W, kH, kW, pad_t, pad_b, pad_l, pad_r, c_blk, stripe):
    # ktab_ref : VMEM (kH*kW, c_blk*stripe)  per-lane tap values for this block
    # x_ref    : VMEM (c_blk, H, W)          input channels for this (b, cb)
    # o_ref    : VMEM (c_blk, H, W)          output channels
    # xp_ref   : VMEM (rows, cols) scratch   packed, zero-padded channel slab
    rows, cols = xp_ref.shape
    lanes = c_blk * stripe
    f32 = jnp.float32

    # --- refresh the halo only (interior gets fully overwritten below) -------
    if pad_t > 0:
        xp_ref[0:pad_t, :] = jnp.zeros((pad_t, cols), f32)
    if pad_b > 0:
        xp_ref[pad_t + H:pad_t + H + pad_b, :] = jnp.zeros((pad_b, cols), f32)

    # vertical gutters between / around the channel stripes (interior rows only;
    # the pad rows above/below were zeroed full-width already).  Adjacent
    # right+left gutters are merged into one (kW-1)-wide strip.
    strips = []
    if pad_l > 0:
        strips.append((0, pad_l))
    for c in range(c_blk):
        start = c * stripe + pad_l + W
        stop = (c + 1) * stripe + (pad_l if c + 1 < c_blk else 0)
        if stop > start:
            strips.append((start, stop - start))
    for start, width in strips:
        xp_ref[pad_t:pad_t + H, start:start + width] = jnp.zeros((H, width), f32)

    # --- drop the c_blk input images into their stripes -----------------------
    for c in range(c_blk):
        col0 = c * stripe + pad_l
        xp_ref[pad_t:pad_t + H, col0:col0 + W] = x_ref[c].astype(f32)

    # --- kH*kW-tap max over the packed slab (lane-dense) ----------------------
    # acc column c*stripe + j holds output (c, :, j); columns >= c*stripe + W
    # inside a stripe are junk and never stored.
    acc = xp_ref[0:H, 0:lanes] - ktab_ref[0:1, :]            # tap (0, 0) inits
    for di in range(kH):
        for dj in range(kW):
            tap = di * kW + dj
            if tap == 0:
                continue
            win = xp_ref[di:di + H, dj:dj + lanes]
            acc = jnp.maximum(acc, win - ktab_ref[tap:tap + 1, :])

    # --- unpack per-channel outputs -------------------------------------------
    for c in range(c_blk):
        o_ref[c] = acc[:, c * stripe:c * stripe + W].astype(o_ref.dtype)


def dilation_r2_forward(x: jnp.ndarray, dil_metric: jnp.ndarray,
                        kernel_size: int, alpha: float = 0.65,
                        t: float = 1.0) -> jnp.ndarray:
    B, C, H, W = x.shape
    kH = kW = kernel_size
    assert kH == kW  # pad_t/pad_l below are swapped (faithful to F.pad order)

    ktab = _make_kernel_table(dil_metric, kernel_size, alpha, t)   # (C, kH, kW)
    ktab = ktab.astype(jnp.float32)

    # F.pad(input, (floor((kH-1)/2), ceil((kH-1)/2), floor((kW-1)/2), ceil((kW-1)/2)))
    # pads W with the kH-derived pair and H with the kW-derived pair — faithful
    # to the PyTorch module (harmless while kH == kW).
    pad_l = (kH - 1) // 2
    pad_r = (kH - 1) - pad_l
    pad_t = (kW - 1) // 2
    pad_b = (kW - 1) - pad_t

    stripe = W + pad_l + pad_r          # padded width of one channel stripe
    c_blk = _pick_c_blk(C, stripe)      # channels packed along lanes per step
    num_cb = C // c_blk
    lanes = c_blk * stripe

    # Per-lane tap table: table[cb, di*kW+dj, c_local*stripe + p] = k[c, di, dj]
    kt = ktab.reshape(num_cb, c_blk, kH * kW)
    kt = jnp.transpose(kt, (0, 2, 1))                    # (num_cb, taps, c_blk)
    tap_tbl = jnp.repeat(kt, stripe, axis=2)             # (num_cb, taps, lanes)

    scratch_rows = _round_up(H + kH - 1, 8)
    scratch_cols = _round_up(lanes + kW - 1, 128)

    kern = functools.partial(_dilation_kernel, H=H, W=W, kH=kH, kW=kW,
                             pad_t=pad_t, pad_b=pad_b, pad_l=pad_l, pad_r=pad_r,
                             c_blk=c_blk, stripe=stripe)

    return pl.pallas_call(
        kern,
        out_shape=jax.ShapeDtypeStruct((B, C, H, W), x.dtype),
        grid_spec=pltpu.PrefetchScalarGridSpec(
            num_scalar_prefetch=0,
            grid=(B, num_cb),
            in_specs=[
                # per-channel-block tap table (same block for all b -> no refetch)
                pl.BlockSpec((None, kH * kW, lanes), lambda b, cb: (cb, 0, 0)),
                # c_blk channels of the input image per step
                pl.BlockSpec((None, c_blk, H, W), lambda b, cb: (b, cb, 0, 0)),
            ],
            out_specs=pl.BlockSpec((None, c_blk, H, W), lambda b, cb: (b, cb, 0, 0)),
            scratch_shapes=[pltpu.VMEM((scratch_rows, scratch_cols), jnp.float32)],
        ),
        compiler_params=pltpu.CompilerParams(
            dimension_semantics=("parallel", "parallel"),
            # Tiny working set here; raise toward ~64-100 MiB on v5e/v6e (keep
            # <= ~48 MiB on v7x) when using much larger H/W or C_BLK blocks.
            vmem_limit_bytes=32 * 1024 * 1024,
        ),
    )(tap_tbl, x)


# ------------------------------ pure-JAX reference ----------------------------

def _reference_forward(x, dil_metric, kernel_size, alpha, t):
    B, C, H, W = x.shape
    kH = kW = kernel_size
    kernel = _make_kernel_table(dil_metric, kernel_size, alpha, t)
    pad_w = (math.floor((kH - 1) / 2), math.ceil((kH - 1) / 2))
    pad_h = (math.floor((kW - 1) / 2), math.ceil((kW - 1) / 2))
    xp = jnp.pad(-x, ((0, 0), (0, 0), pad_h, pad_w), constant_values=0.0)
    acc = jnp.full((B, C, H, W), jnp.inf, dtype=jnp.float32)
    for di in range(kH):
        for dj in range(kW):
            acc = jnp.minimum(
                acc,
                xp[:, :, di:di + H, dj:dj + W]
                + kernel[:, di, dj][None, :, None, None],
            )
    return -acc


# ----------------------------------- main --------------------------------------

if __name__ == "__main__":
    B, C, H, W = 2, 4, 16, 16
    kernel_size = 5
    alpha = 0.65
    t = 1.0

    key = jax.random.PRNGKey(0)
    kx, kw = jax.random.split(key)
    x = jax.random.normal(kx, (B, C, H, W), dtype=jnp.float32)

    # kaiming_uniform_(a=sqrt(2)) on a (C,2,2) tensor:
    #   gain = sqrt(2/(1+a^2)) = sqrt(2/3), fan_in = 2*2 = 4,
    #   bound = gain * sqrt(3/fan_in)
    bound = math.sqrt(2.0 / 3.0) * math.sqrt(3.0 / 4.0)
    dil_metric = jax.random.uniform(kw, (C, 2, 2), minval=-bound, maxval=bound,
                                    dtype=jnp.float32)

    out = dilation_r2_forward(x, dil_metric, kernel_size, alpha=alpha, t=t)
    out = jax.block_until_ready(out)

    ref = _reference_forward(x, dil_metric, kernel_size, alpha, t)
    assert out.shape == (B, C, H, W)
    assert out.dtype == x.dtype
    assert jnp.allclose(out, ref, atol=1e-5, rtol=1e-5)
    print("KERNEL_OK")
</pallas_src>

<mosaic_0001>
module attributes {stable_mosaic.version = 11 : i64} {
  func.func @_dilation_kernel(%arg0: i32, %arg1: i32, %arg2: memref<1x25x80xf32, #tpu.memory_space<vmem>>, %arg3: memref<1x4x16x16xf32, #tpu.memory_space<vmem>>, %arg4: memref<1x4x16x16xf32, #tpu.memory_space<vmem>>, %arg5: memref<24x128xf32, #tpu.memory_space<vmem>>) attributes {dimension_semantics = [#tpu.dimension_semantics<parallel>, #tpu.dimension_semantics<parallel>], iteration_bounds = array<i64: 2, 1>, scalar_prefetch = 0 : i64, scratch_operands = 1 : i64, tpu.core_type = #tpu.core_type<tc>, window_params = [{transform_indices = @transform_0, window_bounds = array<i64: 1, 25, 80>}, {transform_indices = @transform_1, window_bounds = array<i64: 1, 4, 16, 16>}, {transform_indices = @transform_2, window_bounds = array<i64: 1, 4, 16, 16>}]} {
    %cst = arith.constant 0.000000e+00 : f32
    %0 = vector.broadcast %cst : f32 to vector<2x128xf32>
    %c0 = arith.constant 0 : index
    %c0_0 = arith.constant 0 : index
    %1 = vector.load %arg5[%c0, %c0_0] : memref<24x128xf32, #tpu.memory_space<vmem>>, vector<2x128xf32>
    tpu.vector_store %arg5[%c0, %c0_0], %0 {strides = array<i32>} : memref<24x128xf32, #tpu.memory_space<vmem>>, vector<2x128xf32>,
    %cst_1 = arith.constant 0.000000e+00 : f32
    %2 = vector.broadcast %cst_1 : f32 to vector<2x128xf32>
    %c18 = arith.constant 18 : index
    %c0_2 = arith.constant 0 : index
    %3 = vector.load %arg5[%c18, %c0_2] : memref<24x128xf32, #tpu.memory_space<vmem>>, vector<2x128xf32>
    tpu.vector_store %arg5[%c18, %c0_2], %2 {strides = array<i32>} : memref<24x128xf32, #tpu.memory_space<vmem>>, vector<2x128xf32>,
    %cst_3 = arith.constant 0.000000e+00 : f32
    %4 = vector.broadcast %cst_3 : f32 to vector<16x2xf32>
    %c2 = arith.constant 2 : index
    %c0_4 = arith.constant 0 : index
    %5 = vector.load %arg5[%c2, %c0_4] : memref<24x128xf32, #tpu.memory_space<vmem>>, vector<16x2xf32>
    tpu.vector_store %arg5[%c2, %c0_4], %4 {strides = array<i32>} : memref<24x128xf32, #tpu.memory_space<vmem>>, vector<16x2xf32>,
    %cst_5 = arith.constant 0.000000e+00 : f32
    %6 = vector.broadcast %cst_5 : f32 to vector<16x4xf32>
    %c2_6 = arith.constant 2 : index
    %c18_7 = arith.constant 18 : index
    %7 = vector.load %arg5[%c2_6, %c18_7] : memref<24x128xf32, #tpu.memory_space<vmem>>, vector<16x4xf32>
    tpu.vector_store %arg5[%c2_6, %c18_7], %6 {strides = array<i32>} : memref<24x128xf32, #tpu.memory_space<vmem>>, vector<16x4xf32>,
    %cst_8 = arith.constant 0.000000e+00 : f32
    %8 = vector.broadcast %cst_8 : f32 to vector<16x4xf32>
    %c2_9 = arith.constant 2 : index
    %c38 = arith.constant 38 : index
    %9 = vector.load %arg5[%c2_9, %c38] : memref<24x128xf32, #tpu.memory_space<vmem>>, vector<16x4xf32>
    tpu.vector_store %arg5[%c2_9, %c38], %8 {strides = array<i32>} : memref<24x128xf32, #tpu.memory_space<vmem>>, vector<16x4xf32>,
    %cst_10 = arith.constant 0.000000e+00 : f32
    %10 = vector.broadcast %cst_10 : f32 to vector<16x4xf32>
    %c2_11 = arith.constant 2 : index
    %c58 = arith.constant 58 : index
    %11 = vector.load %arg5[%c2_11, %c58] : memref<24x128xf32, #tpu.memory_space<vmem>>, vector<16x4xf32>
    tpu.vector_store %arg5[%c2_11, %c58], %10 {strides = array<i32>} : memref<24x128xf32, #tpu.memory_space<vmem>>, vector<16x4xf32>,
    %cst_12 = arith.constant 0.000000e+00 : f32
    %12 = vector.broadcast %cst_12 : f32 to vector<16x2xf32>
    %c2_13 = arith.constant 2 : index
    %c78 = arith.constant 78 : index
    %13 = vector.load %arg5[%c2_13, %c78] : memref<24x128xf32, #tpu.memory_space<vmem>>, vector<16x2xf32>
    tpu.vector_store %arg5[%c2_13, %c78], %12 {strides = array<i32>} : memref<24x128xf32, #tpu.memory_space<vmem>>, vector<16x2xf32>,
    %c0_14 = arith.constant 0 : index
    %c0_15 = arith.constant 0 : index
    %c0_16 = arith.constant 0 : index
    %c0_17 = arith.constant 0 : index
    %14 = vector.load %arg3[%c0_14, %c0_15, %c0_16, %c0_17] : memref<1x4x16x16xf32, #tpu.memory_space<vmem>>, vector<1x1x16x16xf32>
    %15 = vector.shape_cast %14 : vector<1x1x16x16xf32> to vector<16x16xf32>
    %c2_18 = arith.constant 2 : index
    %c2_19 = arith.constant 2 : index
    %16 = vector.load %arg5[%c2_18, %c2_19] : memref<24x128xf32, #tpu.memory_space<vmem>>, vector<16x16xf32>
    tpu.vector_store %arg5[%c2_18, %c2_19], %15 {strides = array<i32>} : memref<24x128xf32, #tpu.memory_space<vmem>>, vector<16x16xf32>,
    %c0_20 = arith.constant 0 : index
    %c1 = arith.constant 1 : index
    %c0_21 = arith.constant 0 : index
    %c0_22 = arith.constant 0 : index
    %17 = vector.load %arg3[%c0_20, %c1, %c0_21, %c0_22] : memref<1x4x16x16xf32, #tpu.memory_space<vmem>>, vector<1x1x16x16xf32>
    %18 = vector.shape_cast %17 : vector<1x1x16x16xf32> to vector<16x16xf32>
    %c2_23 = arith.constant 2 : index
    %c22 = arith.constant 22 : index
    %19 = vector.load %arg5[%c2_23, %c22] : memref<24x128xf32, #tpu.memory_space<vmem>>, vector<16x16xf32>
    tpu.vector_store %arg5[%c2_23, %c22], %18 {strides = array<i32>} : memref<24x128xf32, #tpu.memory_space<vmem>>, vector<16x16xf32>,
    %c0_24 = arith.constant 0 : index
    %c2_25 = arith.constant 2 : index
    %c0_26 = arith.constant 0 : index
    %c0_27 = arith.constant 0 : index
    %20 = vector.load %arg3[%c0_24, %c2_25, %c0_26, %c0_27] : memref<1x4x16x16xf32, #tpu.memory_space<vmem>>, vector<1x1x16x16xf32>
    %21 = vector.shape_cast %20 : vector<1x1x16x16xf32> to vector<16x16xf32>
    %c2_28 = arith.constant 2 : index
    %c42 = arith.constant 42 : index
    %22 = vector.load %arg5[%c2_28, %c42] : memref<24x128xf32, #tpu.memory_space<vmem>>, vector<16x16xf32>
    tpu.vector_store %arg5[%c2_28, %c42], %21 {strides = array<i32>} : memref<24x128xf32, #tpu.memory_space<vmem>>, vector<16x16xf32>,
    %c0_29 = arith.constant 0 : index
    %c3 = arith.constant 3 : index
    %c0_30 = arith.constant 0 : index
    %c0_31 = arith.constant 0 : index
    %23 = vector.load %arg3[%c0_29, %c3, %c0_30, %c0_31] : memref<1x4x16x16xf32, #tpu.memory_space<vmem>>, vector<1x1x16x16xf32>
    %24 = vector.shape_cast %23 : vector<1x1x16x16xf32> to vector<16x16xf32>
    %c2_32 = arith.constant 2 : index
    %c62 = arith.constant 62 : index
    %25 = vector.load %arg5[%c2_32, %c62] : memref<24x128xf32, #tpu.memory_space<vmem>>, vector<16x16xf32>
    tpu.vector_store %arg5[%c2_32, %c62], %24 {strides = array<i32>} : memref<24x128xf32, #tpu.memory_space<vmem>>, vector<16x16xf32>,
    %c0_33 = arith.constant 0 : index
    %c0_34 = arith.constant 0 : index
    %26 = vector.load %arg5[%c0_33, %c0_34] : memref<24x128xf32, #tpu.memory_space<vmem>>, vector<16x80xf32>
    %c0_35 = arith.constant 0 : index
    %c0_36 = arith.constant 0 : index
    %c0_37 = arith.constant 0 : index
    %27 = vector.load %arg2[%c0_35, %c0_36, %c0_37] : memref<1x25x80xf32, #tpu.memory_space<vmem>>, vector<1x1x80xf32>
    %28 = vector.shape_cast %27 : vector<1x1x80xf32> to vector<1x80xf32>
    %29 = vector.broadcast %28 : vector<1x80xf32> to vector<16x80xf32>
    %30 = arith.subf %26, %29 : vector<16x80xf32>
    %c0_38 = arith.constant 0 : index
    %c1_39 = arith.constant 1 : index
    %31 = vector.load %arg5[%c0_38, %c1_39] : memref<24x128xf32, #tpu.memory_space<vmem>>, vector<16x80xf32>
    %c0_40 = arith.constant 0 : index
    %c1_41 = arith.constant 1 : index
    %c0_42 = arith.constant 0 : index
    %32 = vector.load %arg2[%c0_40, %c1_41, %c0_42] : memref<1x25x80xf32, #tpu.memory_space<vmem>>, vector<1x1x80xf32>
    %33 = vector.shape_cast %32 : vector<1x1x80xf32> to vector<1x80xf32>
    %34 = vector.broadcast %33 : vector<1x80xf32> to vector<16x80xf32>
    %35 = arith.subf %31, %34 : vector<16x80xf32>
    %36 = arith.maximumf %30, %35 : vector<16x80xf32>
    %c0_43 = arith.constant 0 : index
    %c2_44 = arith.constant 2 : index
    %37 = vector.load %arg5[%c0_43, %c2_44] : memref<24x128xf32, #tpu.memory_space<vmem>>, vector<16x80xf32>
    %c0_45 = arith.constant 0 : index
    %c2_46 = arith.constant 2 : index
    %c0_47 = arith.constant 0 : index
    %38 = vector.load %arg2[%c0_45, %c2_46, %c0_47] : memref<1x25x80xf32, #tpu.memory_space<vmem>>, vector<1x1x80xf32>
    %39 = vector.shape_cast %38 : vector<1x1x80xf32> to vector<1x80xf32>
    %40 = vector.broadcast %39 : vector<1x80xf32> to vector<16x80xf32>
    %41 = arith.subf %37, %40 : vector<16x80xf32>
    %42 = arith.maximumf %36, %41 : vector<16x80xf32>
    %c0_48 = arith.constant 0 : index
    %c3_49 = arith.constant 3 : index
    %43 = vector.load %arg5[%c0_48, %c3_49] : memref<24x128xf32, #tpu.memory_space<vmem>>, vector<16x80xf32>
    %c0_50 = arith.constant 0 : index
    %c3_51 = arith.constant 3 : index
    %c0_52 = arith.constant 0 : index
    %44 = vector.load %arg2[%c0_50, %c3_51, %c0_52] : memref<1x25x80xf32, #tpu.memory_space<vmem>>, vector<1x1x80xf32>
    %45 = vector.shape_cast %44 : vector<1x1x80xf32> to vector<1x80xf32>
    %46 = vector.broadcast %45 : vector<1x80xf32> to vector<16x80xf32>
    %47 = arith.subf %43, %46 : vector<16x80xf32>
    %48 = arith.maximumf %42, %47 : vector<16x80xf32>
    %c0_53 = arith.constant 0 : index
    %c4 = arith.constant 4 : index
    %49 = vector.load %arg5[%c0_53, %c4] : memref<24x128xf32, #tpu.memory_space<vmem>>, vector<16x80xf32>
    %c0_54 = arith.constant 0 : index
    %c4_55 = arith.constant 4 : index
    %c0_56 = arith.constant 0 : index
    %50 = vector.load %arg2[%c0_54, %c4_55, %c0_56] : memref<1x25x80xf32, #tpu.memory_space<vmem>>, vector<1x1x80xf32>
    %51 = vector.shape_cast %50 : vector<1x1x80xf32> to vector<1x80xf32>
    %52 = vector.broadcast %51 : vector<1x80xf32> to vector<16x80xf32>
    %53 = arith.subf %49, %52 : vector<16x80xf32>
    %54 = arith.maximumf %48, %53 : vector<16x80xf32>
    %c1_57 = arith.constant 1 : index
    %c0_58 = arith.constant 0 : index
    %55 = vector.load %arg5[%c1_57, %c0_58] : memref<24x128xf32, #tpu.memory_space<vmem>>, vector<16x80xf32>
    %c0_59 = arith.constant 0 : index
    %c5 = arith.constant 5 : index
    %c0_60 = arith.constant 0 : index
    %56 = vector.load %arg2[%c0_59, %c5, %c0_60] : memref<1x25x80xf32, #tpu.memory_space<vmem>>, vector<1x1x80xf32>
    %57 = vector.shape_cast %56 : vector<1x1x80xf32> to vector<1x80xf32>
    %58 = vector.broadcast %57 : vector<1x80xf32> to vector<16x80xf32>
    %59 = arith.subf %55, %58 : vector<16x80xf32>
    %60 = arith.maximumf %54, %59 : vector<16x80xf32>
    %c1_61 = arith.constant 1 : index
    %c1_62 = arith.constant 1 : index
    %61 = vector.load %arg5[%c1_61, %c1_62] : memref<24x128xf32, #tpu.memory_space<vmem>>, vector<16x80xf32>
    %c0_63 = arith.constant 0 : index
    %c6 = arith.constant 6 : index
    %c0_64 = arith.constant 0 : index
    %62 = vector.load %arg2[%c0_63, %c6, %c0_64] : memref<1x25x80xf32, #tpu.memory_space<vmem>>, vector<1x1x80xf32>
    %63 = vector.shape_cast %62 : vector<1x1x80xf32> to vector<1x80xf32>
    %64 = vector.broadcast %63 : vector<1x80xf32> to vector<16x80xf32>
    %65 = arith.subf %61, %64 : vector<16x80xf32>
    %66 = arith.maximumf %60, %65 : vector<16x80xf32>
    %c1_65 = arith.constant 1 : index
    %c2_66 = arith.constant 2 : index
    %67 = vector.load %arg5[%c1_65, %c2_66] : memref<24x128xf32, #tpu.memory_space<vmem>>, vector<16x80xf32>
    %c0_67 = arith.constant 0 : index
    %c7 = arith.constant 7 : index
    %c0_68 = arith.constant 0 : index
    %68 = vector.load %arg2[%c0_67, %c7, %c0_68] : memref<1x25x80xf32, #tpu.memory_space<vmem>>, vector<1x1x80xf32>
    %69 = vector.shape_cast %68 : vector<1x1x80xf32> to vector<1x80xf32>
    %70 = vector.broadcast %69 : vector<1x80xf32> to vector<16x80xf32>
    %71 = arith.subf %67, %70 : vector<16x80xf32>
    %72 = arith.maximumf %66, %71 : vector<16x80xf32>
    %c1_69 = arith.constant 1 : index
    %c3_70 = arith.constant 3 : index
    %73 = vector.load %arg5[%c1_69, %c3_70] : memref<24x128xf32, #tpu.memory_space<vmem>>, vector<16x80xf32>
    %c0_71 = arith.constant 0 : index
    %c8 = arith.constant 8 : index
    %c0_72 = arith.constant 0 : index
    %74 = vector.load %arg2[%c0_71, %c8, %c0_72] : memref<1x25x80xf32, #tpu.memory_space<vmem>>, vector<1x1x80xf32>
    %75 = vector.shape_cast %74 : vector<1x1x80xf32> to vector<1x80xf32>
    %76 = vector.broadcast %75 : vector<1x80xf32> to vector<16x80xf32>
    %77 = arith.subf %73, %76 : vector<16x80xf32>
    %78 = arith.maximumf %72, %77 : vector<16x80xf32>
    %c1_73 = arith.constant 1 : index
    %c4_74 = arith.constant 4 : index
    %79 = vector.load %arg5[%c1_73, %c4_74] : memref<24x128xf32, #tpu.memory_space<vmem>>, vector<16x80xf32>
    %c0_75 = arith.constant 0 : index
    %c9 = arith.constant 9 : index
    %c0_76 = arith.constant 0 : index
    %80 = vector.load %arg2[%c0_75, %c9, %c0_76] : memref<1x25x80xf32, #tpu.memory_space<vmem>>, vector<1x1x80xf32>
    %81 = vector.shape_cast %80 : vector<1x1x80xf32> to vector<1x80xf32>
    %82 = vector.broadcast %81 : vector<1x80xf32> to vector<16x80xf32>
    %83 = arith.subf %79, %82 : vector<16x80xf32>
    %84 = arith.maximumf %78, %83 : vector<16x80xf32>
    %c2_77 = arith.constant 2 : index
    %c0_78 = arith.constant 0 : index
    %85 = vector.load %arg5[%c2_77, %c0_78] : memref<24x128xf32, #tpu.memory_space<vmem>>, vector<16x80xf32>
    %c0_79 = arith.constant 0 : index
    %c10 = arith.constant 10 : index
    %c0_80 = arith.constant 0 : index
    %86 = vector.load %arg2[%c0_79, %c10, %c0_80] : memref<1x25x80xf32, #tpu.memory_space<vmem>>, vector<1x1x80xf32>
    %87 = vector.shape_cast %86 : vector<1x1x80xf32> to vector<1x80xf32>
    %88 = vector.broadcast %87 : vector<1x80xf32> to vector<16x80xf32>
    %89 = arith.subf %85, %88 : vector<16x80xf32>
    %90 = arith.maximumf %84, %89 : vector<16x80xf32>
    %c2_81 = arith.constant 2 : index
    %c1_82 = arith.constant 1 : index
    %91 = vector.load %arg5[%c2_81, %c1_82] : memref<24x128xf32, #tpu.memory_space<vmem>>, vector<16x80xf32>
    %c0_83 = arith.constant 0 : index
    %c11 = arith.constant 11 : index
    %c0_84 = arith.constant 0 : index
    %92 = vector.load %arg2[%c0_83, %c11, %c0_84] : memref<1x25x80xf32, #tpu.memory_space<vmem>>, vector<1x1x80xf32>
    %93 = vector.shape_cast %92 : vector<1x1x80xf32> to vector<1x80xf32>
    %94 = vector.broadcast %93 : vector<1x80xf32> to vector<16x80xf32>
    %95 = arith.subf %91, %94 : vector<16x80xf32>
    %96 = arith.maximumf %90, %95 : vector<16x80xf32>
    %c2_85 = arith.constant 2 : index
    %c2_86 = arith.constant 2 : index
    %97 = vector.load %arg5[%c2_85, %c2_86] : memref<24x128xf32, #tpu.memory_space<vmem>>, vector<16x80xf32>
    %c0_87 = arith.constant 0 : index
    %c12 = arith.constant 12 : index
    %c0_88 = arith.constant 0 : index
    %98 = vector.load %arg2[%c0_87, %c12, %c0_88] : memref<1x25x80xf32, #tpu.memory_space<vmem>>, vector<1x1x80xf32>
    %99 = vector.shape_cast %98 : vector<1x1x80xf32> to vector<1x80xf32>
    %100 = vector.broadcast %99 : vector<1x80xf32> to vector<16x80xf32>
    %101 = arith.subf %97, %100 : vector<16x80xf32>
    %102 = arith.maximumf %96, %101 : vector<16x80xf32>
    %c2_89 = arith.constant 2 : index
    %c3_90 = arith.constant 3 : index
    %103 = vector.load %arg5[%c2_89, %c3_90] : memref<24x128xf32, #tpu.memory_space<vmem>>, vector<16x80xf32>
    %c0_91 = arith.constant 0 : index
    %c13 = arith.constant 13 : index
    %c0_92 = arith.constant 0 : index
    %104 = vector.load %arg2[%c0_91, %c13, %c0_92] : memref<1x25x80xf32, #tpu.memory_space<vmem>>, vector<1x1x80xf32>
    %105 = vector.shape_cast %104 : vector<1x1x80xf32> to vector<1x80xf32>
    %106 = vector.broadcast %105 : vector<1x80xf32> to vector<16x80xf32>
    %107 = arith.subf %103, %106 : vector<16x80xf32>
    %108 = arith.maximumf %102, %107 : vector<16x80xf32>
    %c2_93 = arith.constant 2 : index
    %c4_94 = arith.constant 4 : index
    %109 = vector.load %arg5[%c2_93, %c4_94] : memref<24x128xf32, #tpu.memory_space<vmem>>, vector<16x80xf32>
    %c0_95 = arith.constant 0 : index
    %c14 = arith.constant 14 : index
    %c0_96 = arith.constant 0 : index
    %110 = vector.load %arg2[%c0_95, %c14, %c0_96] : memref<1x25x80xf32, #tpu.memory_space<vmem>>, vector<1x1x80xf32>
    %111 = vector.shape_cast %110 : vector<1x1x80xf32> to vector<1x80xf32>
    %112 = vector.broadcast %111 : vector<1x80xf32> to vector<16x80xf32>
    %113 = arith.subf %109, %112 : vector<16x80xf32>
    %114 = arith.maximumf %108, %113 : vector<16x80xf32>
    %c3_97 = arith.constant 3 : index
    %c0_98 = arith.constant 0 : index
    %115 = vector.load %arg5[%c3_97, %c0_98] : memref<24x128xf32, #tpu.memory_space<vmem>>, vector<16x80xf32>
    %c0_99 = arith.constant 0 : index
    %c15 = arith.constant 15 : index
    %c0_100 = arith.constant 0 : index
    %116 = vector.load %arg2[%c0_99, %c15, %c0_100] : memref<1x25x80xf32, #tpu.memory_space<vmem>>, vector<1x1x80xf32>
    %117 = vector.shape_cast %116 : vector<1x1x80xf32> to vector<1x80xf32>
    %118 = vector.broadcast %117 : vector<1x80xf32> to vector<16x80xf32>
    %119 = arith.subf %115, %118 : vector<16x80xf32>
    %120 = arith.maximumf %114, %119 : vector<16x80xf32>
    %c3_101 = arith.constant 3 : index
    %c1_102 = arith.constant 1 : index
    %121 = vector.load %arg5[%c3_101, %c1_102] : memref<24x128xf32, #tpu.memory_space<vmem>>, vector<16x80xf32>
    %c0_103 = arith.constant 0 : index
    %c16 = arith.constant 16 : index
    %c0_104 = arith.constant 0 : index
    %122 = vector.load %arg2[%c0_103, %c16, %c0_104] : memref<1x25x80xf32, #tpu.memory_space<vmem>>, vector<1x1x80xf32>
    %123 = vector.shape_cast %122 : vector<1x1x80xf32> to vector<1x80xf32>
    %124 = vector.broadcast %123 : vector<1x80xf32> to vector<16x80xf32>
    %125 = arith.subf %121, %124 : vector<16x80xf32>
    %126 = arith.maximumf %120, %125 : vector<16x80xf32>
    %c3_105 = arith.constant 3 : index
    %c2_106 = arith.constant 2 : index
    %127 = vector.load %arg5[%c3_105, %c2_106] : memref<24x128xf32, #tpu.memory_space<vmem>>, vector<16x80xf32>
    %c0_107 = arith.constant 0 : index
    %c17 = arith.constant 17 : index
    %c0_108 = arith.constant 0 : index
    %128 = vector.load %arg2[%c0_107, %c17, %c0_108] : memref<1x25x80xf32, #tpu.memory_space<vmem>>, vector<1x1x80xf32>
    %129 = vector.shape_cast %128 : vector<1x1x80xf32> to vector<1x80xf32>
    %130 = vector.broadcast %129 : vector<1x80xf32> to vector<16x80xf32>
    %131 = arith.subf %127, %130 : vector<16x80xf32>
    %132 = arith.maximumf %126, %131 : vector<16x80xf32>
    %c3_109 = arith.constant 3 : index
    %c3_110 = arith.constant 3 : index
    %133 = vector.load %arg5[%c3_109, %c3_110] : memref<24x128xf32, #tpu.memory_space<vmem>>, vector<16x80xf32>
    %c0_111 = arith.constant 0 : index
    %c18_112 = arith.constant 18 : index
    %c0_113 = arith.constant 0 : index
    %134 = vector.load %arg2[%c0_111, %c18_112, %c0_113] : memref<1x25x80xf32, #tpu.memory_space<vmem>>, vector<1x1x80xf32>
    %135 = vector.shape_cast %134 : vector<1x1x80xf32> to vector<1x80xf32>
    %136 = vector.broadcast %135 : vector<1x80xf32> to vector<16x80xf32>
    %137 = arith.subf %133, %136 : vector<16x80xf32>
    %138 = arith.maximumf %132, %137 : vector<16x80xf32>
    %c3_114 = arith.constant 3 : index
    %c4_115 = arith.constant 4 : index
    %139 = vector.load %arg5[%c3_114, %c4_115] : memref<24x128xf32, #tpu.memory_space<vmem>>, vector<16x80xf32>
    %c0_116 = arith.constant 0 : index
    %c19 = arith.constant 19 : index
    %c0_117 = arith.constant 0 : index
    %140 = vector.load %arg2[%c0_116, %c19, %c0_117] : memref<1x25x80xf32, #tpu.memory_space<vmem>>, vector<1x1x80xf32>
    %141 = vector.shape_cast %140 : vector<1x1x80xf32> to vector<1x80xf32>
    %142 = vector.broadcast %141 : vector<1x80xf32> to vector<16x80xf32>
    %143 = arith.subf %139, %142 : vector<16x80xf32>
    %144 = arith.maximumf %138, %143 : vector<16x80xf32>
    %c4_118 = arith.constant 4 : index
    %c0_119 = arith.constant 0 : index
    %145 = vector.load %arg5[%c4_118, %c0_119] : memref<24x128xf32, #tpu.memory_space<vmem>>, vector<16x80xf32>
    %c0_120 = arith.constant 0 : index
    %c20 = arith.constant 20 : index
    %c0_121 = arith.constant 0 : index
    %146 = vector.load %arg2[%c0_120, %c20, %c0_121] : memref<1x25x80xf32, #tpu.memory_space<vmem>>, vector<1x1x80xf32>
    %147 = vector.shape_cast %146 : vector<1x1x80xf32> to vector<1x80xf32>
    %148 = vector.broadcast %147 : vector<1x80xf32> to vector<16x80xf32>
    %149 = arith.subf %145, %148 : vector<16x80xf32>
    %150 = arith.maximumf %144, %149 : vector<16x80xf32>
    %c4_122 = arith.constant 4 : index
    %c1_123 = arith.constant 1 : index
    %151 = vector.load %arg5[%c4_122, %c1_123] : memref<24x128xf32, #tpu.memory_space<vmem>>, vector<16x80xf32>
    %c0_124 = arith.constant 0 : index
    %c21 = arith.constant 21 : index
    %c0_125 = arith.constant 0 : index
    %152 = vector.load %arg2[%c0_124, %c21, %c0_125] : memref<1x25x80xf32, #tpu.memory_space<vmem>>, vector<1x1x80xf32>
    %153 = vector.shape_cast %152 : vector<1x1x80xf32> to vector<1x80xf32>
    %154 = vector.broadcast %153 : vector<1x80xf32> to vector<16x80xf32>
    %155 = arith.subf %151, %154 : vector<16x80xf32>
    %156 = arith.maximumf %150, %155 : vector<16x80xf32>
    %c4_126 = arith.constant 4 : index
    %c2_127 = arith.constant 2 : index
    %157 = vector.load %arg5[%c4_126, %c2_127] : memref<24x128xf32, #tpu.memory_space<vmem>>, vector<16x80xf32>
    %c0_128 = arith.constant 0 : index
    %c22_129 = arith.constant 22 : index
    %c0_130 = arith.constant 0 : index
    %158 = vector.load %arg2[%c0_128, %c22_129, %c0_130] : memref<1x25x80xf32, #tpu.memory_space<vmem>>, vector<1x1x80xf32>
    %159 = vector.shape_cast %158 : vector<1x1x80xf32> to vector<1x80xf32>
    %160 = vector.broadcast %159 : vector<1x80xf32> to vector<16x80xf32>
    %161 = arith.subf %157, %160 : vector<16x80xf32>
    %162 = arith.maximumf %156, %161 : vector<16x80xf32>
    %c4_131 = arith.constant 4 : index
    %c3_132 = arith.constant 3 : index
    %163 = vector.load %arg5[%c4_131, %c3_132] : memref<24x128xf32, #tpu.memory_space<vmem>>, vector<16x80xf32>
    %c0_133 = arith.constant 0 : index
    %c23 = arith.constant 23 : index
    %c0_134 = arith.constant 0 : index
    %164 = vector.load %arg2[%c0_133, %c23, %c0_134] : memref<1x25x80xf32, #tpu.memory_space<vmem>>, vector<1x1x80xf32>
    %165 = vector.shape_cast %164 : vector<1x1x80xf32> to vector<1x80xf32>
    %166 = vector.broadcast %165 : vector<1x80xf32> to vector<16x80xf32>
    %167 = arith.subf %163, %166 : vector<16x80xf32>
    %168 = arith.maximumf %162, %167 : vector<16x80xf32>
    %c4_135 = arith.constant 4 : index
    %c4_136 = arith.constant 4 : index
    %169 = vector.load %arg5[%c4_135, %c4_136] : memref<24x128xf32, #tpu.memory_space<vmem>>, vector<16x80xf32>
    %c0_137 = arith.constant 0 : index
    %c24 = arith.constant 24 : index
    %c0_138 = arith.constant 0 : index
    %170 = vector.load %arg2[%c0_137, %c24, %c0_138] : memref<1x25x80xf32, #tpu.memory_space<vmem>>, vector<1x1x80xf32>
    %171 = vector.shape_cast %170 : vector<1x1x80xf32> to vector<1x80xf32>
    %172 = vector.broadcast %171 : vector<1x80xf32> to vector<16x80xf32>
    %173 = arith.subf %169, %172 : vector<16x80xf32>
    %174 = arith.maximumf %168, %173 : vector<16x80xf32>
    %175 = vector.extract_strided_slice %174 {offsets = [0, 0], sizes = [16, 16], strides = [1, 1]} : vector<16x80xf32> to vector<16x16xf32>
    %c0_139 = arith.constant 0 : index
    %c0_140 = arith.constant 0 : index
    %c0_141 = arith.constant 0 : index
    %c0_142 = arith.constant 0 : index
    %176 = vector.load %arg4[%c0_139, %c0_140, %c0_141, %c0_142] : memref<1x4x16x16xf32, #tpu.memory_space<vmem>>, vector<1x1x16x16xf32>
    %177 = vector.shape_cast %176 : vector<1x1x16x16xf32> to vector<16x16xf32>
    %178 = vector.shape_cast %175 : vector<16x16xf32> to vector<1x1x16x16xf32>
    tpu.vector_store %arg4[%c0_139, %c0_140, %c0_141, %c0_142], %178 {strides = array<i32>} : memref<1x4x16x16xf32, #tpu.memory_space<vmem>>, vector<1x1x16x16xf32>,
    %179 = vector.extract_strided_slice %174 {offsets = [0, 20], sizes = [16, 16], strides = [1, 1]} : vector<16x80xf32> to vector<16x16xf32>
    %c0_143 = arith.constant 0 : index
    %c1_144 = arith.constant 1 : index
    %c0_145 = arith.constant 0 : index
    %c0_146 = arith.constant 0 : index
    %180 = vector.load %arg4[%c0_143, %c1_144, %c0_145, %c0_146] : memref<1x4x16x16xf32, #tpu.memory_space<vmem>>, vector<1x1x16x16xf32>
    %181 = vector.shape_cast %180 : vector<1x1x16x16xf32> to vector<16x16xf32>
    %182 = vector.shape_cast %179 : vector<16x16xf32> to vector<1x1x16x16xf32>
    tpu.vector_store %arg4[%c0_143, %c1_144, %c0_145, %c0_146], %182 {strides = array<i32>} : memref<1x4x16x16xf32, #tpu.memory_space<vmem>>, vector<1x1x16x16xf32>,
    %183 = vector.extract_strided_slice %174 {offsets = [0, 40], sizes = [16, 16], strides = [1, 1]} : vector<16x80xf32> to vector<16x16xf32>
    %c0_147 = arith.constant 0 : index
    %c2_148 = arith.constant 2 : index
    %c0_149 = arith.constant 0 : index
    %c0_150 = arith.constant 0 : index
    %184 = vector.load %arg4[%c0_147, %c2_148, %c0_149, %c0_150] : memref<1x4x16x16xf32, #tpu.memory_space<vmem>>, vector<1x1x16x16xf32>
    %185 = vector.shape_cast %184 : vector<1x1x16x16xf32> to vector<16x16xf32>
    %186 = vector.shape_cast %183 : vector<16x16xf32> to vector<1x1x16x16xf32>
    tpu.vector_store %arg4[%c0_147, %c2_148, %c0_149, %c0_150], %186 {strides = array<i32>} : memref<1x4x16x16xf32, #tpu.memory_space<vmem>>, vector<1x1x16x16xf32>,
    %187 = vector.extract_strided_slice %174 {offsets = [0, 60], sizes = [16, 16], strides = [1, 1]} : vector<16x80xf32> to vector<16x16xf32>
    %c0_151 = arith.constant 0 : index
    %c3_152 = arith.constant 3 : index
    %c0_153 = arith.constant 0 : index
    %c0_154 = arith.constant 0 : index
    %188 = vector.load %arg4[%c0_151, %c3_152, %c0_153, %c0_154] : memref<1x4x16x16xf32, #tpu.memory_space<vmem>>, vector<1x1x16x16xf32>
    %189 = vector.shape_cast %188 : vector<1x1x16x16xf32> to vector<16x16xf32>
    %190 = vector.shape_cast %187 : vector<16x16xf32> to vector<1x1x16x16xf32>
    tpu.vector_store %arg4[%c0_151, %c3_152, %c0_153, %c0_154], %190 {strides = array<i32>} : memref<1x4x16x16xf32, #tpu.memory_space<vmem>>, vector<1x1x16x16xf32>,
    return
  }
  func.func @transform_0(%arg0: i32, %arg1: i32) -> (i32, i32, i32) {
    %c0_i32 = arith.constant 0 : i32
    %c0_i32_0 = arith.constant 0 : i32
    %c0_i32_1 = arith.constant 0 : i32
    return %arg1, %c0_i32, %c0_i32_0 : i32, i32, i32
  }
  func.func @transform_1(%arg0: i32, %arg1: i32) -> (i32, i32, i32, i32) {
    %c0_i32 = arith.constant 0 : i32
    %c0_i32_0 = arith.constant 0 : i32
    %c0_i32_1 = arith.constant 0 : i32
    return %arg0, %arg1, %c0_i32, %c0_i32_0 : i32, i32, i32, i32
  }
  func.func @transform_2(%arg0: i32, %arg1: i32) -> (i32, i32, i32, i32) {
    %c0_i32 = arith.constant 0 : i32
    %c0_i32_0 = arith.constant 0 : i32
    %c0_i32_1 = arith.constant 0 : i32
    return %arg0, %arg1, %c0_i32, %c0_i32_0 : i32, i32, i32, i32
  }
}

</mosaic_0001>

<bundles_post_ra>
// kernel: tpu_custom_call.1
= control target key start
LH: loop header
LB: loop body
LE: loop exit
PB: predicated region body
PF: predicated region fallthrough
CT: control target
= control target key end

     0   :  { %7 = vsyncpa [#allocation4], 0  ;;  %s1556_s0 = inlined_call_operand.vmem [shape: f32[1,25,80], index: 0, kind: input, shape index: {}]   ;;  %s1557_s1 = inlined_call_operand.hbm [shape: f32[2,4,16,16], index: 1, kind: input, shape index: {}]   ;;  %s1558_s2 = inlined_call_operand.hbm [shape: f32[2,4,16,16], index: 2, kind: output, shape index: {}]  }
   0x1   :  { %9 = vsyncpa [#allocation4 + $0x1], 0 }
   0x2   :  { %10 = vsyncpa [#allocation5], 0 }
   0x3   :  { %12 = vsyncpa [#allocation5 + $0x1], 0  ;;  %s1181_s9 = smov 0   ;;  %s1183_s10 = smov 0  }
   0x4   :  { %s1185_s11 = smov 0   ;;  %s1187_s12 = smov 0  }
   0x5   :  { %s1189_s13 = smov 0   ;;  %s1191_s14 = smov 0  }
   0x6 LB: > { %s899_s15 = sadd.s32 4294967295, %s1143_s14   ;;  %s900_s16 = sadd.s32 4294967294, %s1143_s14   ;;  %s1143_s14 = sphi %s1191_s14, %s18_s14   ;;  %s1139_s13 = sphi %s1189_s13, %s1569_s13   ;;  %s1135_s12 = sphi %s1187_s12, %s1568_s12   ;;  %s1131_s11 = sphi %s1185_s11, %s1567_s11   ;;  %s1127_s10 = sphi %s1183_s10, %s1566_s10   ;;  %s1123_s9 = sphi %s1181_s9, %s1565_s9  }
   0x7   : > { %s30_s17 = sadd.s32 1, %s1139_s13  ;;  %s65_s18 = sadd.s32 1, %s1131_s11 }
   0x8   : > { %p32_p0 = scmp.ge.s32.totalorder %s30_s17, 2  ;;  %p72_p1 = scmp.ne.s32.totalorder %s1131_s11, %s1127_s10 }
   0x9   : > { %p73_p2 = scmp.eq.s32.totalorder %s1143_s14, 0  ;;  %p78_p3 = scmp.ne.s32.totalorder %s1127_s10, %s1123_s9 }
   0xa   : > { %s1571_s17 = smov (%p32_p0, %s30_s17), 0  ;;  %p79_p5 = scmp.eq.s32.totalorder %s899_s15, 0 }
   0xb   : > { %p1222_p4 = por %p73_p2, %p72_p1  ;;  %s60_s20 = ssub.s32 %s1139_s13, %s1571_s17 }
   0xc   : > { %p104_p6 = scmp.eq.s32.totalorder %s899_s15, 1  ;;  %p63_p7 = scmp.eq.s32.totalorder %s60_s20, 0 }
   0xd   : > { %p1228_p8 = por %p79_p5, %p78_p3  ;;  %p110_p10 = scmp.eq.s32.totalorder %s900_s16, 1 }
   0xe   : > { %p1232_p9 = por %p104_p6, %p72_p1  ;;  %p966_p13 = scmp.lt.s32.totalorder %s1143_s14, 2 }
   0xf   : > { %s1237_s23 = scalar_select %p63_p7, %s1131_s11, %s65_s18  }
  0x10   : > { %p1239_p11 = por %p110_p10, %p78_p3  ;;  %s138_s25 = sand.u32 1, %s1131_s11  }
  0x11   : > { %s904_s26 = sshll.u32 %s138_s25, 6  ;;  %s952_s27 = sshll.u32 %s1139_s13, 10 }
  0x12   : > { %s151_s30 = scalar_lea.hbm %s1557_s1, %s952_s27  ;;  %s142_s3 = scalar_lea.vmem [#allocation3], %s904_s26 }
  0x13   : > { %s152_s4 = sshll.u32 %s142_s3, 4  ;;  %p1252_p0 = pnand %p966_p13, %p1222_p4  ;;  %s153_s4 = int_to_ptr.vmem [resolvable:$true] %s152_s4 }
  0x14   : > { %p907_p1 = scmp.ge.s32.totalorder %s1143_s14, 1  ;;  %s139_s6 = scalar_lea.sflag [#allocation4], %s138_s25 }
  0x15   : > { %p1037_p2 = pneg %p1252_p0  ;;  %s1048_s7 = scalar_lea.vmem %s153_s4, 1024 }
  0x16   : > { %p1049_p3 = scmp.ne.s32.totalorder %s153_s4, %s1048_s7  ;;  %s1145_s8 = smov [#allocation3]  }
  0x17   : > { %s1053_s15 = sshll.u32 %s1145_s8, 4  ;;  %s1054_s15 = int_to_ptr.vmem [resolvable:$false] %s1053_s15 }
  0x18   : > { %p1051_p5 = pnand %p1049_p3, %p1037_p2  ;;  %s1055_s16 = scalar_lea.vmem %s1054_s15, 2048 }
  0x19   : > { %p1056_p7 = scmp.lt.s32.totalorder %s153_s4, %s1054_s15  ;;  %p1057_p10 = scmp.lt.s32.totalorder %s1055_s16, %s1048_s7 }
  0x1a   : > { %p1052_p6 = pneg %p1051_p5 }
  0x1b   : > { %p1058_p12 = por %p1057_p10, %p1056_p7 }
  0x1d   : > { %p1059_p4 = pnand %p1058_p12, %p1052_p6 }
  0x1f   : > { %1062 = shalt.err (!%p1059_p4)
}
  0x20   : > { %s1146_s18 = smov 128   ;;  %s1147_s19 = smov 8  }
  0x21   : > { %961 = dma.hbm_to_vmem [thread:$0]  (!%p1252_p0), %s151_s30, 1024, %s153_s4, %s139_s6, %s1146_s18, %s1146_s18, %s1147_s19  }
  0x22   : > { %p160_p13 = scmp.lt.s32.totalorder %s1143_s14, 3 }
  0x24   : > { %p161_p2 = pnand %p907_p1, %p160_p13 }
  0x25   : > { %s1265_s20 = sand.u32 (!%p161_p2), 1, %s1127_s10  }
  0x26   : > { %164 = sbr.rel (%p161_p2) target bundleno = 513 (0x201), region = 28  ;;  %s908_s25 = sshll.u32 (!%p161_p2), %s1265_s20, 6 }
  0x27   : > { %s167_s26 = scalar_lea.sflag (!%p161_p2), [#allocation4], %s1265_s20  ;;  %s1271_s27 = scalar_lea.vmem (!%p161_p2), [#allocation3], %s908_s25 }
  0x2b   : > { %1114 = dma.done.wait (%p1228_p8), %s167_s26, 1024  }
  0x2c   : > { %1116 = vsyncadd (%p1228_p8), %s167_s26, 4294966272  ;;  %vm205_vm0 = vcmask 15360   ;;  %vm208_vm1 = vcmask 179344   ;;  %vm211_vm2 = vcmask 343344   ;;  %vm214_vm3 = vcmask 507344   ;;  %v910_v1 = vld [vmem:[%s1271_s27 + $0x10] sm:$0xff] }
  0x2d   : > { %v1148_v0 = vmov 0.0   ;;  %vm217_vm4 = vcmask 654960   ;;  %v220_v2 = vld [vmem:[%s1271_s27] sm:$0xff]  ;;  %s1149_s21 = smov 22   ;;  %s1150_s28 = smov 2   ;;  %v911_v3 = vld [vmem:[%s1271_s27 + $0x18] sm:$0xff] }
  0x2e   : > { %206 = vst.msk [vmem:[#allocation2 + $0x2] sm:$0xff] %vm205_vm0, %v1148_v0  ;;  %203 = vst [vmem:[#allocation2] sm:$0x3] %v1148_v0  ;;  %238 = vrot.lane.b32.xlu1 %v910_v1, %s1149_s21  ;;  %224 = vrot.lane.b32.xlu0 %v220_v2, %s1150_s28  ;;  %v221_v4 = vld [vmem:[%s1271_s27 + $0x8] sm:$0xff]  ;;  %v912_v6 = vld [vmem:[%s1271_s27 + $0x20] sm:$0xff]  ;;  %s1151_s29 = smov 42  }
  0x2f   : > { %204 = vst [vmem:[#allocation2 + $0x12] sm:$0x3] %v1148_v0  ;;  %207 = vst.msk [vmem:[#allocation2 + $0xa] sm:$0xff] %vm205_vm0, %v1148_v0  ;;  %v913_v5 = vld [vmem:[%s1271_s27 + $0x28] sm:$0xff]  ;;  %v915_v7 = vld [vmem:[%s1271_s27 + $0x38] sm:$0xff]  ;;  %s1152_s30 = smov 62  }
  0x30   : > { %209 = vst.msk [vmem:[#allocation2 + $0x2] sm:$0xff] %vm208_vm1, %v1148_v0  ;;  %210 = vst.msk [vmem:[#allocation2 + $0xa] sm:$0xff] %vm208_vm1, %v1148_v0  ;;  %v914_v8 = vld [vmem:[%s1271_s27 + $0x30] sm:$0xff]  ;;  %v918_v9 = vld [vmem:[%s1556_s0 + $0x2] ss:$0 sm:$0xff]  ;;  %s1153_s7 = smov 1  }
  0x31   : > { %212 = vst.msk [vmem:[#allocation2 + $0x2] sm:$0xff] %vm211_vm2, %v1148_v0  ;;  %213 = vst.msk [vmem:[#allocation2 + $0xa] sm:$0xff] %vm211_vm2, %v1148_v0  ;;  %v917_v10 = vld [vmem:[%s1556_s0 + $0x1] ss:$0 sm:$0xff]  ;;  %v920_v11 = vld [vmem:[%s1556_s0 + $0x4] ss:$0 sm:$0xff] }
  0x32   : > { %215 = vst.msk [vmem:[#allocation2 + $0x2] sm:$0xff] %vm214_vm3, %v1148_v0  ;;  %216 = vst.msk [vmem:[#allocation2 + $0xa] sm:$0xff] %vm214_vm3, %v1148_v0  ;;  %240 = vrot.lane.b32.xlu1 %v911_v3, %s1149_s21  ;;  %226 = vrot.lane.b32.xlu0 %v221_v4, %s1150_s28  ;;  %v919_v12 = vld [vmem:[%s1556_s0 + $0x3] ss:$0 sm:$0xff]  ;;  %s1154_s19 = smov 4   ;;  %s1155_s26 = smov 3  }
  0x33   : > { %218 = vst.msk [vmem:[#allocation2 + $0x2] sm:$0xff] %vm217_vm4, %v1148_v0  ;;  %219 = vst.msk [vmem:[#allocation2 + $0xa] sm:$0xff] %vm217_vm4, %v1148_v0  ;;  %v923_v13 = vld [vmem:[%s1556_s0 + $0x7] ss:$0 sm:$0xff]  ;;  %v922_v14 = vld [vmem:[%s1556_s0 + $0x6] ss:$0 sm:$0xff] }
  0x34   : > { %v925_v15 = vld [vmem:[%s1556_s0 + $0x9] ss:$0 sm:$0xff]  ;;  %v924_v16 = vld [vmem:[%s1556_s0 + $0x8] ss:$0 sm:$0xff]  ;;  %v928_v17 = vld [vmem:[%s1556_s0 + $0xc] ss:$0 sm:$0xff] }
  0x35   : > { %v927_v18 = vld [vmem:[%s1556_s0 + $0xb] ss:$0 sm:$0xff]  ;;  %v930_v19 = vld [vmem:[%s1556_s0 + $0xe] ss:$0 sm:$0xff]  ;;  %v929_v20 = vld [vmem:[%s1556_s0 + $0xd] ss:$0 sm:$0xff] }
  0x36   : > { %254 = vrot.lane.b32.xlu1 %v913_v5, %s1151_s29  ;;  %252 = vrot.lane.b32.xlu0 %v912_v6, %s1151_s29  ;;  %v933_v21 = vld [vmem:[%s1556_s0 + $0x11] ss:$0 sm:$0xff]  ;;  %v932_v22 = vld [vmem:[%s1556_s0 + $0x10] ss:$0 sm:$0xff]  ;;  %vm230_vm5 = vcmask 146448   ;;  %vm244_vm6 = vcmask 310448  }
  0x37   : > { %v935_v23 = vld [vmem:[%s1556_s0 + $0x13] ss:$0 sm:$0xff]  ;;  %v934_v24 = vld [vmem:[%s1556_s0 + $0x12] ss:$0 sm:$0xff]  ;;  %v938_v25 = vld [vmem:[%s1556_s0 + $0x16] ss:$0 sm:$0xff] }
  0x38   : > { %v937_v26 = vld [vmem:[%s1556_s0 + $0x15] ss:$0 sm:$0xff]  ;;  %v940_v27 = vld [vmem:[%s1556_s0 + $0x18] ss:$0 sm:$0xff]  ;;  %v939_v28 = vld [vmem:[%s1556_s0 + $0x17] ss:$0 sm:$0xff] }
  0x39   : > { %vm258_vm7 = vcmask 474448   ;;  %vm272_vm8 = vcmask 638448   ;;  %vm748_vm9 = vcmask 130048   ;;  %s195_s5 = scalar_lea.vmem [#allocation6], %s908_s25  ;;  %s1160_s6 = smov 108  }
  0x3a   : > { %268 = vrot.lane.b32.xlu1 %v915_v7, %s1152_s30  ;;  %266 = vrot.lane.b32.xlu0 %v914_v8, %s1152_s30  ;;  %s953_s25 = sshll.u32 %s1135_s12, 10  ;;  %s781_s12 = scalar_lea.sflag [#allocation5], %s1265_s20 }
  0x3b   : > { %s1504_s15 = scalar_lea.hbm %s1558_s2, %s953_s25  ;;  %s1163_s18 = smov [#allocation6]  }
  0x3c   : > { %s1067_s27 = sshll.u32 %s1163_s18, 4  ;;  %s1068_s27 = int_to_ptr.vmem [resolvable:$false] %s1067_s27 }
  0x3d   : > { %s1069_s21 = scalar_lea.vmem %s1068_s27, 2048 }
  0x3e   : > { %311 = vrot.lane.b32.xlu1 %v918_v9, %s1150_s28  ;;  %290 = vrot.lane.b32.xlu0 %v917_v10, %s1153_s7 }
  0x42   : > { %353 = vrot.lane.b32.xlu1 %v920_v11, %s1154_s19  ;;  %332 = vrot.lane.b32.xlu0 %v919_v12, %s1155_s26 }
  0x46   : > { %406 = vrot.lane.b32.xlu1 %v923_v13, %s1150_s28  ;;  %385 = vrot.lane.b32.xlu0 %v922_v14, %s1153_s7 }
  0x4a   : > { %448 = vrot.lane.b32.xlu1 %v925_v15, %s1154_s19  ;;  %427 = vrot.lane.b32.xlu0 %v924_v16, %s1155_s26 }
  0x4e   : > { %501 = vrot.lane.b32.xlu1 %v928_v17, %s1150_s28  ;;  %480 = vrot.lane.b32.xlu0 %v927_v18, %s1153_s7 }
  0x52   : > { %543 = vrot.lane.b32.xlu1 %v930_v19, %s1154_s19  ;;  %522 = vrot.lane.b32.xlu0 %v929_v20, %s1155_s26 }
  0x56   : > { %596 = vrot.lane.b32.xlu1 %v933_v21, %s1150_s28  ;;  %575 = vrot.lane.b32.xlu0 %v932_v22, %s1153_s7 }
  0x5a   : > { %638 = vrot.lane.b32.xlu1 %v935_v23, %s1154_s19  ;;  %617 = vrot.lane.b32.xlu0 %v934_v24, %s1155_s26 }
  0x5e   : > { %691 = vrot.lane.b32.xlu1 %v938_v25, %s1150_s28  ;;  %670 = vrot.lane.b32.xlu0 %v937_v26, %s1153_s7  ;;  %s1156_s28 = smov 127   ;;  %s1157_s7 = smov 126  }
  0x62   : > { %733 = vrot.lane.b32.xlu1 %v940_v27, %s1154_s19  ;;  %712 = vrot.lane.b32.xlu0 %v939_v28, %s1155_s26  ;;  %s1158_s19 = smov 125   ;;  %s1159_s26 = smov 124  }
  0xa0   : > { %v239_v29 = vpop.permute.xlu1 %238  ;;  %v225_v30 = vpop.permute.xlu0 %224 }
  0xa1   : > { %231 = vst.msk [vmem:[#allocation2 + $0x2] sm:$0xff] %vm230_vm5, %v225_v30 }
  0xa2   : > { %245 = vst.msk [vmem:[#allocation2 + $0x2] sm:$0xff] %vm244_vm6, %v239_v29 }
  0xa4   : > { %v241_v31 = vpop.permute.xlu1 %240  ;;  %v227_v32 = vpop.permute.xlu0 %226 }
  0xa5   : > { %232 = vst.msk [vmem:[#allocation2 + $0xa] sm:$0xff] %vm230_vm5, %v227_v32 }
  0xa6   : > { %246 = vst.msk [vmem:[#allocation2 + $0xa] sm:$0xff] %vm244_vm6, %v241_v31 }
  0xa8   : > { %v255_v33 = vpop.permute.xlu1 %254  ;;  %v253_v34 = vpop.permute.xlu0 %252 }
  0xa9   : > { %260 = vst.msk [vmem:[#allocation2 + $0xa] sm:$0xff] %vm258_vm7, %v255_v33  ;;  %259 = vst.msk [vmem:[#allocation2 + $0x2] sm:$0xff] %vm258_vm7, %v253_v34 }
  0xac   : > { %v269_v35 = vpop.permute.xlu1 %268  ;;  %v267_v36 = vpop.permute.xlu0 %266 }
  0xad   : > { %274 = vst.msk [vmem:[#allocation2 + $0xa] sm:$0xff] %vm272_vm8, %v269_v35  ;;  %273 = vst.msk [vmem:[#allocation2 + $0x2] sm:$0xff] %vm272_vm8, %v267_v36 }
  0xb0   : > { %v291_v39 = vpop.permute.xlu0 %290  ;;  %v312_v42 = vpop.permute.xlu1 %311 }
  0xb4   : > { %v1367_v37 = vld [vmem:[#allocation2] sm:$0xff]  ;;  %v1369_v38 = vld [vmem:[#allocation2 + $0x8] sm:$0xff]  ;;  %v333_v45 = vpop.permute.xlu0 %332  ;;  %v354_v48 = vpop.permute.xlu1 %353 }
  0xb5   : > { %v293_v40 = vsub.f32 %v1367_v37, %v291_v39  ;;  %v294_v41 = vsub.f32 %v1369_v38, %v291_v39  ;;  %v314_v43 = vsub.f32 %v1367_v37, %v312_v42  ;;  %v315_v44 = vsub.f32 %v1369_v38, %v312_v42  ;;  %v1387_v52 = vld [vmem:[#allocation2 + $0x1] sm:$0xff]  ;;  %v1389_v53 = vld [vmem:[#allocation2 + $0x9] sm:$0xff] }
  0xb6   : > { %v335_v46 = vsub.f32 %v1367_v37, %v333_v45  ;;  %v336_v47 = vsub.f32 %v1369_v38, %v333_v45  ;;  %v356_v49 = vsub.f32 %v1367_v37, %v354_v48  ;;  %v357_v50 = vsub.f32 %v1369_v38, %v354_v48  ;;  %v1407_v2 = vld [vmem:[#allocation2 + $0x2] sm:$0xff]  ;;  %v1409_v3 = vld [vmem:[#allocation2 + $0xa] sm:$0xff] }
  0xb7   : > { %299 = vrot.lane.b32.xlu1 %v294_v41, %s1156_s28  ;;  %297 = vrot.lane.b32.xlu0 %v293_v40, %s1156_s28  ;;  %v1427_v16 = vld [vmem:[#allocation2 + $0x3] sm:$0xff]  ;;  %v1429_v17 = vld [vmem:[#allocation2 + $0xb] sm:$0xff] }
  0xb8   : > { %v386_v51 = vpop.permute.xlu0 %385  ;;  %v407_v56 = vpop.permute.xlu1 %406  ;;  %v1447_v30 = vld [vmem:[#allocation2 + $0x4] sm:$0xff]  ;;  %v1449_v31 = vld [vmem:[#allocation2 + $0xc] sm:$0xff] }
  0xb9   : > { %v388_v54 = vsub.f32 %v1387_v52, %v386_v51  ;;  %v389_v55 = vsub.f32 %v1389_v53, %v386_v51  ;;  %v409_v57 = vsub.f32 %v1387_v52, %v407_v56  ;;  %v410_v58 = vsub.f32 %v1389_v53, %v407_v56 }
  0xbb   : > { %320 = vrot.lane.b32.xlu1 %v315_v44, %s1157_s7  ;;  %318 = vrot.lane.b32.xlu0 %v314_v43, %s1157_s7 }
  0xbc   : > { %v428_v59 = vpop.permute.xlu0 %427  ;;  %v449_v62 = vpop.permute.xlu1 %448 }
  0xbd   : > { %v430_v60 = vsub.f32 %v1387_v52, %v428_v59  ;;  %v431_v61 = vsub.f32 %v1389_v53, %v428_v59  ;;  %v451_v63 = vsub.f32 %v1387_v52, %v449_v62  ;;  %v452_v0 = vsub.f32 %v1389_v53, %v449_v62 }
  0xbf   : > { %341 = vrot.lane.b32.xlu1 %v336_v47, %s1158_s19  ;;  %339 = vrot.lane.b32.xlu0 %v335_v46, %s1158_s19  ;;  %v916_v47 = vld [vmem:[%s1556_s0] ss:$0 sm:$0xff] }
  0xc0   : > { %v481_v1 = vpop.permute.xlu0 %480  ;;  %v502_v6 = vpop.permute.xlu1 %501  ;;  %v282_v51 = vsub.f32 %v1367_v37, %v916_v47 }
  0xc1   : > { %v483_v4 = vsub.f32 %v1407_v2, %v481_v1  ;;  %v484_v5 = vsub.f32 %v1409_v3, %v481_v1  ;;  %v504_v7 = vsub.f32 %v1407_v2, %v502_v6  ;;  %v505_v8 = vsub.f32 %v1409_v3, %v502_v6 }
  0xc3   : > { %362 = vrot.lane.b32.xlu1 %v357_v50, %s1159_s26  ;;  %360 = vrot.lane.b32.xlu0 %v356_v49, %s1159_s26  ;;  %v283_v50 = vsub.f32 %v1369_v38, %v916_v47 }
  0xc4   : > { %v523_v9 = vpop.permute.xlu0 %522  ;;  %v544_v12 = vpop.permute.xlu1 %543 }
  0xc5   : > { %v525_v10 = vsub.f32 %v1407_v2, %v523_v9  ;;  %v526_v11 = vsub.f32 %v1409_v3, %v523_v9  ;;  %v546_v13 = vsub.f32 %v1407_v2, %v544_v12  ;;  %v547_v14 = vsub.f32 %v1409_v3, %v544_v12 }
  0xc7   : > { %394 = vrot.lane.b32.xlu1 %v389_v55, %s1156_s28  ;;  %392 = vrot.lane.b32.xlu0 %v388_v54, %s1156_s28 }
  0xc8   : > { %v576_v15 = vpop.permute.xlu0 %575  ;;  %v597_v20 = vpop.permute.xlu1 %596 }
  0xc9   : > { %v578_v18 = vsub.f32 %v1427_v16, %v576_v15  ;;  %v579_v19 = vsub.f32 %v1429_v17, %v576_v15  ;;  %v599_v21 = vsub.f32 %v1427_v16, %v597_v20  ;;  %v600_v22 = vsub.f32 %v1429_v17, %v597_v20 }
  0xcb   : > { %415 = vrot.lane.b32.xlu1 %v410_v58, %s1157_s7  ;;  %413 = vrot.lane.b32.xlu0 %v409_v57, %s1157_s7 }
  0xcc   : > { %v618_v23 = vpop.permute.xlu0 %617  ;;  %v639_v26 = vpop.permute.xlu1 %638 }
  0xcd   : > { %v620_v24 = vsub.f32 %v1427_v16, %v618_v23  ;;  %v621_v25 = vsub.f32 %v1429_v17, %v618_v23  ;;  %v641_v27 = vsub.f32 %v1427_v16, %v639_v26  ;;  %v642_v28 = vsub.f32 %v1429_v17, %v639_v26 }
  0xcf   : > { %436 = vrot.lane.b32.xlu1 %v431_v61, %s1158_s19  ;;  %434 = vrot.lane.b32.xlu0 %v430_v60, %s1158_s19  ;;  %v921_v60 = vld [vmem:[%s1556_s0 + $0x5] ss:$0 sm:$0xff] }
  0xd0   : > { %v671_v29 = vpop.permute.xlu0 %670  ;;  %v692_v34 = vpop.permute.xlu1 %691  ;;  %v376_v38 = vsub.f32 %v1389_v53, %v921_v60  ;;  %v375_v37 = vsub.f32 %v1387_v52, %v921_v60 }
  0xd1   : > { %v673_v32 = vsub.f32 %v1447_v30, %v671_v29  ;;  %v674_v33 = vsub.f32 %v1449_v31, %v671_v29  ;;  %v694_v35 = vsub.f32 %v1447_v30, %v692_v34  ;;  %v695_v36 = vsub.f32 %v1449_v31, %v692_v34 }
  0xd3   : > { %457 = vrot.lane.b32.xlu1 %v452_v0, %s1159_s26  ;;  %455 = vrot.lane.b32.xlu0 %v451_v63, %s1159_s26 }
  0xd4   : > { %v713_v39 = vpop.permute.xlu0 %712  ;;  %v734_v42 = vpop.permute.xlu1 %733 }
  0xd5   : > { %v715_v40 = vsub.f32 %v1447_v30, %v713_v39  ;;  %v716_v41 = vsub.f32 %v1449_v31, %v713_v39  ;;  %v736_v43 = vsub.f32 %v1447_v30, %v734_v42  ;;  %v737_v44 = vsub.f32 %v1449_v31, %v734_v42  ;;  %v931_v42 = vld [vmem:[%s1556_s0 + $0xf] ss:$0 sm:$0xff] }
  0xd6   : > { %v566_v47 = vsub.f32 %v1429_v17, %v931_v42 }
  0xd7   : > { %489 = vrot.lane.b32.xlu1 %v484_v5, %s1156_s28  ;;  %487 = vrot.lane.b32.xlu0 %v483_v4, %s1156_s28 }
  0xdb   : > { %510 = vrot.lane.b32.xlu1 %v505_v8, %s1157_s7  ;;  %508 = vrot.lane.b32.xlu0 %v504_v7, %s1157_s7 }
  0xdf   : > { %531 = vrot.lane.b32.xlu1 %v526_v11, %s1158_s19  ;;  %529 = vrot.lane.b32.xlu0 %v525_v10, %s1158_s19 }
  0xe3   : > { %552 = vrot.lane.b32.xlu1 %v547_v14, %s1159_s26  ;;  %550 = vrot.lane.b32.xlu0 %v546_v13, %s1159_s26 }
  0xe7   : > { %584 = vrot.lane.b32.xlu1 %v579_v19, %s1156_s28  ;;  %582 = vrot.lane.b32.xlu0 %v578_v18, %s1156_s28  ;;  %v926_v19 = vld [vmem:[%s1556_s0 + $0xa] ss:$0 sm:$0xff] }
  0xeb   : > { %605 = vrot.lane.b32.xlu1 %v600_v22, %s1157_s7  ;;  %603 = vrot.lane.b32.xlu0 %v599_v21, %s1157_s7 }
  0xef   : > { %626 = vrot.lane.b32.xlu1 %v621_v25, %s1158_s19  ;;  %624 = vrot.lane.b32.xlu0 %v620_v24, %s1158_s19  ;;  %v471_v24 = vsub.f32 %v1409_v3, %v926_v19  ;;  %v470_v25 = vsub.f32 %v1407_v2, %v926_v19 }
  0xf3   : > { %647 = vrot.lane.b32.xlu1 %v642_v28, %s1159_s26  ;;  %645 = vrot.lane.b32.xlu0 %v641_v27, %s1159_s26 }
  0xf7   : > { %679 = vrot.lane.b32.xlu1 %v674_v33, %s1156_s28  ;;  %677 = vrot.lane.b32.xlu0 %v673_v32, %s1156_s28  ;;  %s1161_s28 = smov 88  }
  0xfb   : > { %700 = vrot.lane.b32.xlu1 %v695_v36, %s1157_s7  ;;  %698 = vrot.lane.b32.xlu0 %v694_v35, %s1157_s7  ;;  %s1162_s7 = smov 68  }
  0xff   : > { %721 = vrot.lane.b32.xlu1 %v716_v41, %s1158_s19  ;;  %719 = vrot.lane.b32.xlu0 %v715_v40, %s1158_s19  ;;  %s797_s19 = sshll.u32 %s195_s5, 4  ;;  %s1506_s19 = int_to_ptr.vmem [resolvable:$true] %s797_s19 }
 0x100   : > { %s1063_s16 = scalar_lea.vmem %s1506_s19, 1024  ;;  %p1070_p1 = scmp.lt.s32.totalorder %s1506_s19, %s1068_s27 }
 0x101   : > { %p1064_p8 = scmp.ne.s32.totalorder %s1506_s19, %s1063_s16  ;;  %p1071_p3 = scmp.lt.s32.totalorder %s1069_s21, %s1063_s16 }
 0x103   : > { %742 = vrot.lane.b32.xlu1 %v737_v44, %s1159_s26  ;;  %740 = vrot.lane.b32.xlu0 %v736_v43, %s1159_s26  ;;  %p1065_p12 = pnand %p1064_p8, %p1232_p9  ;;  %p1072_p5 = por %p1071_p3, %p1070_p1 }
 0x105   : > { %p1066_p0 = pneg %p1065_p12 }
 0x107   : > { %p1073_p6 = pnand %p1072_p5, %p1066_p0 }
 0x129   : > { %v300_v45 = vpop.permute.xlu1 %299  ;;  %v298_v46 = vpop.permute.xlu0 %297 }
 0x12a   : > { %v304_v54 = vmax.f32 %v283_v50, %v300_v45  ;;  %v303_v55 = vmax.f32 %v282_v51, %v298_v46 }
 0x12d   : > { %v321_v48 = vpop.permute.xlu1 %320  ;;  %v319_v49 = vpop.permute.xlu0 %318 }
 0x12e   : > { %v325_v58 = vmax.f32 %v304_v54, %v321_v48  ;;  %v324_v59 = vmax.f32 %v303_v55, %v319_v49  ;;  %v565_v48 = vsub.f32 %v1427_v16, %v931_v42 }
 0x131   : > { %v342_v56 = vpop.permute.xlu1 %341  ;;  %v340_v57 = vpop.permute.xlu0 %339 }
 0x132   : > { %v346_v61 = vmax.f32 %v325_v58, %v342_v56  ;;  %v345_v62 = vmax.f32 %v324_v59, %v340_v57 }
 0x135   : > { %v363_v63 = vpop.permute.xlu1 %362  ;;  %v361_v0 = vpop.permute.xlu0 %360 }
 0x136   : > { %v367_v1 = vmax.f32 %v346_v61, %v363_v63  ;;  %v366_v4 = vmax.f32 %v345_v62, %v361_v0  ;;  %v936_v63 = vld [vmem:[%s1556_s0 + $0x14] ss:$0 sm:$0xff] }
 0x138   : > { %v378_v5 = vmax.f32 %v367_v1, %v376_v38  ;;  %v377_v6 = vmax.f32 %v366_v4, %v375_v37  ;;  %v661_v37 = vsub.f32 %v1449_v31, %v936_v63 }
 0x139   : > { %v395_v7 = vpop.permute.xlu1 %394  ;;  %v393_v8 = vpop.permute.xlu0 %392 }
 0x13a   : > { %v399_v11 = vmax.f32 %v378_v5, %v395_v7  ;;  %v398_v12 = vmax.f32 %v377_v6, %v393_v8  ;;  %v660_v5 = vsub.f32 %v1447_v30, %v936_v63 }
 0x13d   : > { %v416_v9 = vpop.permute.xlu1 %415  ;;  %v414_v10 = vpop.permute.xlu0 %413 }
 0x13e   : > { %v420_v15 = vmax.f32 %v399_v11, %v416_v9  ;;  %v419_v18 = vmax.f32 %v398_v12, %v414_v10 }
 0x141   : > { %v437_v13 = vpop.permute.xlu1 %436  ;;  %v435_v14 = vpop.permute.xlu0 %434 }
 0x142   : > { %v441_v20 = vmax.f32 %v420_v15, %v437_v13  ;;  %v440_v53 = vmax.f32 %v419_v18, %v435_v14 }
 0x145   : > { %v458_v21 = vpop.permute.xlu1 %457  ;;  %v456_v52 = vpop.permute.xlu0 %455 }
 0x146   : > { %v462_v22 = vmax.f32 %v441_v20, %v458_v21  ;;  %v461_v23 = vmax.f32 %v440_v53, %v456_v52 }
 0x148   : > { %v473_v26 = vmax.f32 %v462_v22, %v471_v24  ;;  %v472_v27 = vmax.f32 %v461_v23, %v470_v25 }
 0x149   : > { %v490_v28 = vpop.permute.xlu1 %489  ;;  %v488_v29 = vpop.permute.xlu0 %487 }
 0x14a   : > { %v494_v34 = vmax.f32 %v473_v26, %v490_v28  ;;  %v493_v35 = vmax.f32 %v472_v27, %v488_v29 }
 0x14d   : > { %v511_v32 = vpop.permute.xlu1 %510  ;;  %v509_v33 = vpop.permute.xlu0 %508 }
 0x14e   : > { %v515_v40 = vmax.f32 %v494_v34, %v511_v32  ;;  %v514_v41 = vmax.f32 %v493_v35, %v509_v33 }
 0x151   : > { %v532_v36 = vpop.permute.xlu1 %531  ;;  %v530_v39 = vpop.permute.xlu0 %529 }
 0x152   : > { %v536_v43 = vmax.f32 %v515_v40, %v532_v36  ;;  %v535_v3 = vmax.f32 %v514_v41, %v530_v39 }
 0x155   : > { %v553_v44 = vpop.permute.xlu1 %552  ;;  %v551_v2 = vpop.permute.xlu0 %550 }
 0x156   : > { %v557_v45 = vmax.f32 %v536_v43, %v553_v44  ;;  %v556_v46 = vmax.f32 %v535_v3, %v551_v2 }
 0x158   : > { %v568_v49 = vmax.f32 %v557_v45, %v566_v47  ;;  %v567_v50 = vmax.f32 %v556_v46, %v565_v48 }
 0x159   : > { %v585_v51 = vpop.permute.xlu1 %584  ;;  %v583_v54 = vpop.permute.xlu0 %582 }
 0x15a   : > { %v589_v57 = vmax.f32 %v568_v49, %v585_v51  ;;  %v588_v58 = vmax.f32 %v567_v50, %v583_v54 }
 0x15d   : > { %v606_v55 = vpop.permute.xlu1 %605  ;;  %v604_v56 = vpop.permute.xlu0 %603 }
 0x15e   : > { %v610_v61 = vmax.f32 %v589_v57, %v606_v55  ;;  %v609_v62 = vmax.f32 %v588_v58, %v604_v56 }
 0x161   : > { %v627_v59 = vpop.permute.xlu1 %626  ;;  %v625_v60 = vpop.permute.xlu0 %624 }
 0x162   : > { %v631_v0 = vmax.f32 %v610_v61, %v627_v59  ;;  %v630_v17 = vmax.f32 %v609_v62, %v625_v60 }
 0x165   : > { %v648_v1 = vpop.permute.xlu1 %647  ;;  %v646_v16 = vpop.permute.xlu0 %645 }
 0x166   : > { %v652_v4 = vmax.f32 %v631_v0, %v648_v1  ;;  %v651_v38 = vmax.f32 %v630_v17, %v646_v16 }
 0x168   : > { %v663_v6 = vmax.f32 %v652_v4, %v661_v37  ;;  %v662_v7 = vmax.f32 %v651_v38, %v660_v5 }
 0x169   : > { %v680_v8 = vpop.permute.xlu1 %679  ;;  %v678_v9 = vpop.permute.xlu0 %677 }
 0x16a   : > { %v684_v12 = vmax.f32 %v663_v6, %v680_v8  ;;  %v683_v13 = vmax.f32 %v662_v7, %v678_v9 }
 0x16d   : > { %v701_v10 = vpop.permute.xlu1 %700  ;;  %v699_v11 = vpop.permute.xlu0 %698 }
 0x16e   : > { %v705_v18 = vmax.f32 %v684_v12, %v701_v10  ;;  %v704_v19 = vmax.f32 %v683_v13, %v699_v11 }
 0x171   : > { %v722_v14 = vpop.permute.xlu1 %721  ;;  %v720_v15 = vpop.permute.xlu0 %719 }
 0x172   : > { %v726_v20 = vmax.f32 %v705_v18, %v722_v14  ;;  %v725_v53 = vmax.f32 %v704_v19, %v720_v15 }
 0x175   : > { %v743_v21 = vpop.permute.xlu1 %742  ;;  %v741_v31 = vpop.permute.xlu0 %740 }
 0x176   : > { %v747_v52 = vmax.f32 %v726_v20, %v743_v21  ;;  %v746_v30 = vmax.f32 %v725_v53, %v741_v31 }
 0x178   : > { %750 = vst.msk [vmem:[%s195_s5 + $0x8] sm:$0xff] %vm748_vm9, %v747_v52  ;;  %749 = vst.msk [vmem:[%s195_s5] sm:$0xff] %vm748_vm9, %v746_v30  ;;  %755 = vrot.lane.b32.xlu1 %v747_v52, %s1160_s6  ;;  %753 = vrot.lane.b32.xlu0 %v746_v30, %s1160_s6 }
 0x17c   : > { %764 = vrot.lane.b32.xlu1 %v747_v52, %s1161_s28  ;;  %762 = vrot.lane.b32.xlu0 %v746_v30, %s1161_s28 }
 0x180   : > { %773 = vrot.lane.b32.xlu1 %v747_v52, %s1162_s7  ;;  %771 = vrot.lane.b32.xlu0 %v746_v30, %s1162_s7 }
 0x1ea   : > { %v756_v22 = vpop.permute.xlu1 %755  ;;  %v754_v23 = vpop.permute.xlu0 %753 }
 0x1eb   : > { %942 = vst.msk [vmem:[%s195_s5 + $0x18] sm:$0xff] %vm748_vm9, %v756_v22  ;;  %941 = vst.msk [vmem:[%s195_s5 + $0x10] sm:$0xff] %vm748_vm9, %v754_v23 }
 0x1ee   : > { %v765_v24 = vpop.permute.xlu1 %764  ;;  %v763_v25 = vpop.permute.xlu0 %762 }
 0x1ef   : > { %944 = vst.msk [vmem:[%s195_s5 + $0x28] sm:$0xff] %vm748_vm9, %v765_v24  ;;  %943 = vst.msk [vmem:[%s195_s5 + $0x20] sm:$0xff] %vm748_vm9, %v763_v25 }
 0x1f2   : > { %v774_v26 = vpop.permute.xlu1 %773  ;;  %v772_v27 = vpop.permute.xlu0 %771 }
 0x1f3   : > { %946 = vst.msk [vmem:[%s195_s5 + $0x38] sm:$0xff] %vm748_vm9, %v774_v26  ;;  %945 = vst.msk [vmem:[%s195_s5 + $0x30] sm:$0xff] %vm748_vm9, %v772_v27 }
 0x1f4   : > { %1076 = shalt.err (!%p1073_p6)
}
 0x1f5   : > { %s1077_s29 = scalar_lea.hbm %s1504_s15, 1024  ;;  %s1081_s4 = scalar_lea.hbm %s1558_s2, 2048 }
 0x1f6   : > { %p1078_p7 = scmp.ne.s32.totalorder %s1504_s15, %s1077_s29  ;;  %p1082_p13 = scmp.lt.s32.totalorder %s1504_s15, %s1558_s2 }
 0x1f7   : > { %p1083_p2 = scmp.lt.s32.totalorder %s1081_s4, %s1077_s29 }
 0x1f8   : > { %p1079_p10 = pnand %p1078_p7, %p1232_p9 }
 0x1f9   : > { %p1084_p8 = por %p1083_p2, %p1082_p13 }
 0x1fa   : > { %p1080_p4 = pneg %p1079_p10 }
 0x1fc   : > { %p1085_p12 = pnand %p1084_p8, %p1080_p4 }
 0x1fe   : > { %1088 = shalt.err (!%p1085_p12)
}
 0x1ff   : > { %s1164_s28 = smov 128   ;;  %s1165_s7 = smov 8  }
 0x200   : > { %956 = dma.vmem_to_hbm [thread:$0]  (%p1232_p9), %s1506_s19, 1024, %s1504_s15, %s781_s12, %s1164_s28, %s1164_s28, %s1165_s7  }
 0x201 PF: > { %s812_s25 = sand.u32 1, %s1123_s9   ;;  %p1564_p0 = scmp.ge.s32.totalorder %s1143_s14, 2 }
 0x202   : > { %s813_s26 = scalar_lea.sflag [#allocation5], %s812_s25 }
 0x203   : > { %p963_p1 = pnand %p1564_p0, %p1239_p11 }
 0x205   : > { %p964_p3 = pneg %p963_p1 }
 0x207   : > { %1118 = dma.done.wait (%p964_p3), %s813_s26, 1024  }
 0x208   : > { %1120 = vsyncadd (%p964_p3), %s813_s26, 4294966272  ;;  %s18_s14 = sadd.s32 1, %s1143_s14   ;;  %s1565_s9 = smov %s1127_s10 }
 0x209   : > { %p15_p5 = scmp.ge.s32.totalorder %s18_s14, 4   ;;  %s1566_s10 = smov %s1131_s11 }
 0x20a   : > { %s1567_s11 = smov %s1237_s23  ;;  %s1568_s12 = smov %s1139_s13 }
 0x20b   : > { %s1569_s13 = smov %s1571_s17  ;;  %17 = sbr.rel (!%p15_p5) target bundleno = 6 (0x6), region = 82 }
 0x210   :  { %818 = vsyncpa [#allocation4], 1 }
 0x211   :  { %820 = vsyncpa [#allocation4 + $0x1], 1 }
 0x212   :  { %821 = vsyncpa [#allocation5], 1 }
 0x213   :  { %823 = vsyncpa [#allocation5 + $0x1], 1 }

</bundles_post_ra>
